<compile_context>
chip_gen: v7x
topology: tpu7x:2x2x1
jax: 0.10.0
libtpu: 0.0.40
codegen_flags: <defaults>
</compile_context>

<pallas_src>
import jax
import jax.numpy as jnp
from jax.experimental import pallas as pl
from jax.experimental.pallas import tpu as pltpu


def _lstm_kernel(x_ref, wih_ref, whh_ref, b_ref, wd_ref, bd_ref, out_ref):
    B, T, I = x_ref.shape
    H = whh_ref.shape[0]

    # ---- hoisted input projection: one batched MXU matmul over all timesteps ----
    # (B, T, I) -> (B*T, I): collapses the leading dim onto the sublane axis;
    # T is a multiple of the f32 sublane tile (8), so this is layout-preserving.
    x_flat = x_ref[...].reshape(B * T, I)
    gates_x = (jnp.dot(x_flat, wih_ref[...], preferred_element_type=jnp.float32)
               + b_ref[...])                        # (B*T, 4H)
    gates_x = gates_x.reshape(B, T, 4 * H)          # tile-aligned split, batch-major

    w_hh = whh_ref[...]
    h = jnp.zeros((B, H), jnp.float32)
    c = jnp.zeros((B, H), jnp.float32)

    # ---- recurrence: fully unrolled, only the h @ W_hh matmul is on the serial path ----
    # TODO(synk): for large T, switch to lax.fori_loop over a (B, T, 4H) VMEM scratch.
    for t in range(T):
        gates = gates_x[:, t, :] + jnp.dot(h, w_hh,
                                           preferred_element_type=jnp.float32)
        sig = jax.nn.sigmoid(gates)                 # one full-width EUP pass
        th = jnp.tanh(gates)                        # one full-width EUP pass
        i_g = sig[:, 0 * H:1 * H]
        f_g = sig[:, 1 * H:2 * H]
        g_g = th[:, 2 * H:3 * H]
        o_g = sig[:, 3 * H:4 * H]
        c = f_g * c + i_g * g_g
        h = o_g * jnp.tanh(c)

    # dense head on the last hidden state (single_output=True)
    out_ref[...] = (jnp.dot(h, wd_ref[...], preferred_element_type=jnp.float32)
                    + bd_ref[...]).astype(out_ref.dtype)


def base_lstm_forward(x_btf, w_ih, w_hh, b, w_dense, b_dense):
    """x_btf: (B, T, I) batch-first input. b must be b_ih + b_hh. Returns (B, O)."""
    B, T, I = x_btf.shape
    H = w_hh.shape[0]
    O = w_dense.shape[1]

    grid_spec = pltpu.PrefetchScalarGridSpec(
        num_scalar_prefetch=0,
        grid=(1,),                                   # single invocation
        in_specs=[
            pl.BlockSpec((B, T, I), lambda i: (0, 0, 0)),   # x (batch-first, no transpose)
            pl.BlockSpec((I, 4 * H), lambda i: (0, 0)),     # W_ih
            pl.BlockSpec((H, 4 * H), lambda i: (0, 0)),     # W_hh
            pl.BlockSpec((1, 4 * H), lambda i: (0, 0)),     # bias (b_ih + b_hh)
            pl.BlockSpec((H, O), lambda i: (0, 0)),         # dense W
            pl.BlockSpec((1, O), lambda i: (0, 0)),         # dense b
        ],
        out_specs=pl.BlockSpec((B, O), lambda i: (0, 0)),
    )

    return pl.pallas_call(
        _lstm_kernel,
        out_shape=jax.ShapeDtypeStruct((B, O), jnp.float32),
        grid_spec=grid_spec,
        compiler_params=pltpu.CompilerParams(
            dimension_semantics=("arbitrary",)),
    )(x_btf, w_ih, w_hh, b, w_dense, b_dense)


def _reference_forward(x_btf, w_ih, w_hh, b, w_dense, b_dense):
    """Plain-JAX reference (same semantics) for verification."""
    x = jnp.transpose(x_btf, (1, 0, 2))  # (T, B, I)
    B = x.shape[1]
    H = w_hh.shape[0]
    h = jnp.zeros((B, H), jnp.float32)
    c = jnp.zeros((B, H), jnp.float32)

    def step(carry, x_t):
        h, c = carry
        gates = (x_t @ w_ih + b) + h @ w_hh
        i_g = jax.nn.sigmoid(gates[:, 0 * H:1 * H])
        f_g = jax.nn.sigmoid(gates[:, 1 * H:2 * H])
        g_g = jnp.tanh(gates[:, 2 * H:3 * H])
        o_g = jax.nn.sigmoid(gates[:, 3 * H:4 * H])
        c = f_g * c + i_g * g_g
        h = o_g * jnp.tanh(c)
        return (h, c), h

    (h, c), _ = jax.lax.scan(step, (h, c), x)
    return h @ w_dense + b_dense


if __name__ == "__main__":
    # small shapes consistent with the module
    B, T, I, H, O = 2, 8, 4, 32, 16

    key = jax.random.PRNGKey(0)
    k0, k1, k2, k3, k4, k5 = jax.random.split(key, 6)

    x = jax.random.normal(k0, (B, T, I), dtype=jnp.float32)

    scale = 1.0 / jnp.sqrt(H)
    w_ih = jax.random.uniform(k1, (I, 4 * H), jnp.float32, -scale, scale)
    w_hh = jax.random.uniform(k2, (H, 4 * H), jnp.float32, -scale, scale)
    b = jax.random.uniform(k3, (1, 4 * H), jnp.float32, -scale, scale)      # b_ih + b_hh pre-summed
    w_dense = jax.random.uniform(k4, (H, O), jnp.float32, -scale, scale)
    b_dense = jax.random.uniform(k5, (1, O), jnp.float32, -scale, scale)

    out = base_lstm_forward(x, w_ih, w_hh, b, w_dense, b_dense)
    out = jax.block_until_ready(out)

    ref = _reference_forward(x, w_ih, w_hh, b, w_dense, b_dense)
    assert out.shape == (B, O)
    assert jnp.allclose(out, ref, atol=1e-5, rtol=1e-4)

    print("KERNEL_OK")
</pallas_src>

<mosaic_0001>
module attributes {stable_mosaic.version = 11 : i64} {
  func.func @_lstm_kernel(%arg0: i32, %arg1: memref<2x8x4xf32, #tpu.memory_space<vmem>>, %arg2: memref<4x128xf32, #tpu.memory_space<vmem>>, %arg3: memref<32x128xf32, #tpu.memory_space<vmem>>, %arg4: memref<1x128xf32, #tpu.memory_space<vmem>>, %arg5: memref<32x16xf32, #tpu.memory_space<vmem>>, %arg6: memref<1x16xf32, #tpu.memory_space<vmem>>, %arg7: memref<2x16xf32, #tpu.memory_space<vmem>>) attributes {dimension_semantics = [#tpu.dimension_semantics<arbitrary>], iteration_bounds = array<i64: 1>, scalar_prefetch = 0 : i64, scratch_operands = 0 : i64, tpu.core_type = #tpu.core_type<tc>, window_params = [{pipeline_mode = #tpu.pipeline_mode<synchronous>, transform_indices = @transform_0, window_bounds = array<i64: 2, 8, 4>}, {pipeline_mode = #tpu.pipeline_mode<synchronous>, transform_indices = @transform_1, window_bounds = array<i64: 4, 128>}, {pipeline_mode = #tpu.pipeline_mode<synchronous>, transform_indices = @transform_2, window_bounds = array<i64: 32, 128>}, {pipeline_mode = #tpu.pipeline_mode<synchronous>, transform_indices = @transform_3, window_bounds = array<i64: 1, 128>}, {pipeline_mode = #tpu.pipeline_mode<synchronous>, transform_indices = @transform_4, window_bounds = array<i64: 32, 16>}, {pipeline_mode = #tpu.pipeline_mode<synchronous>, transform_indices = @transform_5, window_bounds = array<i64: 1, 16>}, {pipeline_mode = #tpu.pipeline_mode<synchronous>, transform_indices = @transform_6, window_bounds = array<i64: 2, 16>}]} {
    %c0 = arith.constant 0 : index
    %c0_0 = arith.constant 0 : index
    %c0_1 = arith.constant 0 : index
    %0 = vector.load %arg1[%c0, %c0_0, %c0_1] : memref<2x8x4xf32, #tpu.memory_space<vmem>>, vector<2x8x4xf32>
    %1 = vector.shape_cast %0 : vector<2x8x4xf32> to vector<16x4xf32>
    %c0_2 = arith.constant 0 : index
    %c0_3 = arith.constant 0 : index
    %2 = vector.load %arg2[%c0_2, %c0_3] : memref<4x128xf32, #tpu.memory_space<vmem>>, vector<4x128xf32>
    %cst = arith.constant dense<0.000000e+00> : vector<16x128xf32>
    %3 = tpu.matmul %1, %2, %cst {dimension_numbers = #tpu.dot_dimension_numbers<[1], [0], [0], [1], [0, 0, 1, 1], [], []>} : vector<16x4xf32>, vector<4x128xf32>, vector<16x128xf32> -> vector<16x128xf32>
    %c0_4 = arith.constant 0 : index
    %c0_5 = arith.constant 0 : index
    %4 = vector.load %arg4[%c0_4, %c0_5] : memref<1x128xf32, #tpu.memory_space<vmem>>, vector<1x128xf32>
    %5 = vector.broadcast %4 : vector<1x128xf32> to vector<16x128xf32>
    %6 = arith.addf %3, %5 : vector<16x128xf32>
    %7 = vector.shape_cast %6 : vector<16x128xf32> to vector<2x8x128xf32>
    %c0_6 = arith.constant 0 : index
    %c0_7 = arith.constant 0 : index
    %8 = vector.load %arg3[%c0_6, %c0_7] : memref<32x128xf32, #tpu.memory_space<vmem>>, vector<32x128xf32>
    %cst_8 = arith.constant 0.000000e+00 : f32
    %9 = vector.broadcast %cst_8 : f32 to vector<2x32xf32>
    %cst_9 = arith.constant 0.000000e+00 : f32
    %10 = vector.broadcast %cst_9 : f32 to vector<2x32xf32>
    %11 = vector.extract_strided_slice %7 {offsets = [0, 0, 0], sizes = [2, 1, 128], strides = [1, 1, 1]} : vector<2x8x128xf32> to vector<2x1x128xf32>
    %12 = vector.shape_cast %11 : vector<2x1x128xf32> to vector<2x128xf32>
    %cst_10 = arith.constant dense<0.000000e+00> : vector<2x128xf32>
    %13 = tpu.matmul %9, %8, %cst_10 {dimension_numbers = #tpu.dot_dimension_numbers<[1], [0], [0], [1], [0, 0, 1, 1], [], []>} : vector<2x32xf32>, vector<32x128xf32>, vector<2x128xf32> -> vector<2x128xf32>
    %14 = arith.addf %12, %13 : vector<2x128xf32>
    %15 = arith.negf %14 : vector<2x128xf32>
    %16 = math.exp %15 : vector<2x128xf32>
    %cst_11 = arith.constant 1.000000e+00 : f32
    %17 = vector.broadcast %cst_11 : f32 to vector<2x128xf32>
    %18 = arith.addf %17, %16 : vector<2x128xf32>
    %19 = arith.divf %17, %18 : vector<2x128xf32>
    %20 = math.tanh %14 : vector<2x128xf32>
    %21 = vector.extract_strided_slice %19 {offsets = [0, 0], sizes = [2, 32], strides = [1, 1]} : vector<2x128xf32> to vector<2x32xf32>
    %22 = vector.extract_strided_slice %19 {offsets = [0, 32], sizes = [2, 32], strides = [1, 1]} : vector<2x128xf32> to vector<2x32xf32>
    %23 = vector.extract_strided_slice %20 {offsets = [0, 64], sizes = [2, 32], strides = [1, 1]} : vector<2x128xf32> to vector<2x32xf32>
    %24 = vector.extract_strided_slice %19 {offsets = [0, 96], sizes = [2, 32], strides = [1, 1]} : vector<2x128xf32> to vector<2x32xf32>
    %25 = arith.mulf %22, %10 : vector<2x32xf32>
    %26 = arith.mulf %21, %23 : vector<2x32xf32>
    %27 = arith.addf %25, %26 : vector<2x32xf32>
    %28 = math.tanh %27 : vector<2x32xf32>
    %29 = arith.mulf %24, %28 : vector<2x32xf32>
    %30 = vector.extract_strided_slice %7 {offsets = [0, 1, 0], sizes = [2, 1, 128], strides = [1, 1, 1]} : vector<2x8x128xf32> to vector<2x1x128xf32>
    %31 = vector.shape_cast %30 : vector<2x1x128xf32> to vector<2x128xf32>
    %cst_12 = arith.constant dense<0.000000e+00> : vector<2x128xf32>
    %32 = tpu.matmul %29, %8, %cst_12 {dimension_numbers = #tpu.dot_dimension_numbers<[1], [0], [0], [1], [0, 0, 1, 1], [], []>} : vector<2x32xf32>, vector<32x128xf32>, vector<2x128xf32> -> vector<2x128xf32>
    %33 = arith.addf %31, %32 : vector<2x128xf32>
    %34 = arith.negf %33 : vector<2x128xf32>
    %35 = math.exp %34 : vector<2x128xf32>
    %cst_13 = arith.constant 1.000000e+00 : f32
    %36 = vector.broadcast %cst_13 : f32 to vector<2x128xf32>
    %37 = arith.addf %36, %35 : vector<2x128xf32>
    %38 = arith.divf %36, %37 : vector<2x128xf32>
    %39 = math.tanh %33 : vector<2x128xf32>
    %40 = vector.extract_strided_slice %38 {offsets = [0, 0], sizes = [2, 32], strides = [1, 1]} : vector<2x128xf32> to vector<2x32xf32>
    %41 = vector.extract_strided_slice %38 {offsets = [0, 32], sizes = [2, 32], strides = [1, 1]} : vector<2x128xf32> to vector<2x32xf32>
    %42 = vector.extract_strided_slice %39 {offsets = [0, 64], sizes = [2, 32], strides = [1, 1]} : vector<2x128xf32> to vector<2x32xf32>
    %43 = vector.extract_strided_slice %38 {offsets = [0, 96], sizes = [2, 32], strides = [1, 1]} : vector<2x128xf32> to vector<2x32xf32>
    %44 = arith.mulf %41, %27 : vector<2x32xf32>
    %45 = arith.mulf %40, %42 : vector<2x32xf32>
    %46 = arith.addf %44, %45 : vector<2x32xf32>
    %47 = math.tanh %46 : vector<2x32xf32>
    %48 = arith.mulf %43, %47 : vector<2x32xf32>
    %49 = vector.extract_strided_slice %7 {offsets = [0, 2, 0], sizes = [2, 1, 128], strides = [1, 1, 1]} : vector<2x8x128xf32> to vector<2x1x128xf32>
    %50 = vector.shape_cast %49 : vector<2x1x128xf32> to vector<2x128xf32>
    %cst_14 = arith.constant dense<0.000000e+00> : vector<2x128xf32>
    %51 = tpu.matmul %48, %8, %cst_14 {dimension_numbers = #tpu.dot_dimension_numbers<[1], [0], [0], [1], [0, 0, 1, 1], [], []>} : vector<2x32xf32>, vector<32x128xf32>, vector<2x128xf32> -> vector<2x128xf32>
    %52 = arith.addf %50, %51 : vector<2x128xf32>
    %53 = arith.negf %52 : vector<2x128xf32>
    %54 = math.exp %53 : vector<2x128xf32>
    %cst_15 = arith.constant 1.000000e+00 : f32
    %55 = vector.broadcast %cst_15 : f32 to vector<2x128xf32>
    %56 = arith.addf %55, %54 : vector<2x128xf32>
    %57 = arith.divf %55, %56 : vector<2x128xf32>
    %58 = math.tanh %52 : vector<2x128xf32>
    %59 = vector.extract_strided_slice %57 {offsets = [0, 0], sizes = [2, 32], strides = [1, 1]} : vector<2x128xf32> to vector<2x32xf32>
    %60 = vector.extract_strided_slice %57 {offsets = [0, 32], sizes = [2, 32], strides = [1, 1]} : vector<2x128xf32> to vector<2x32xf32>
    %61 = vector.extract_strided_slice %58 {offsets = [0, 64], sizes = [2, 32], strides = [1, 1]} : vector<2x128xf32> to vector<2x32xf32>
    %62 = vector.extract_strided_slice %57 {offsets = [0, 96], sizes = [2, 32], strides = [1, 1]} : vector<2x128xf32> to vector<2x32xf32>
    %63 = arith.mulf %60, %46 : vector<2x32xf32>
    %64 = arith.mulf %59, %61 : vector<2x32xf32>
    %65 = arith.addf %63, %64 : vector<2x32xf32>
    %66 = math.tanh %65 : vector<2x32xf32>
    %67 = arith.mulf %62, %66 : vector<2x32xf32>
    %68 = vector.extract_strided_slice %7 {offsets = [0, 3, 0], sizes = [2, 1, 128], strides = [1, 1, 1]} : vector<2x8x128xf32> to vector<2x1x128xf32>
    %69 = vector.shape_cast %68 : vector<2x1x128xf32> to vector<2x128xf32>
    %cst_16 = arith.constant dense<0.000000e+00> : vector<2x128xf32>
    %70 = tpu.matmul %67, %8, %cst_16 {dimension_numbers = #tpu.dot_dimension_numbers<[1], [0], [0], [1], [0, 0, 1, 1], [], []>} : vector<2x32xf32>, vector<32x128xf32>, vector<2x128xf32> -> vector<2x128xf32>
    %71 = arith.addf %69, %70 : vector<2x128xf32>
    %72 = arith.negf %71 : vector<2x128xf32>
    %73 = math.exp %72 : vector<2x128xf32>
    %cst_17 = arith.constant 1.000000e+00 : f32
    %74 = vector.broadcast %cst_17 : f32 to vector<2x128xf32>
    %75 = arith.addf %74, %73 : vector<2x128xf32>
    %76 = arith.divf %74, %75 : vector<2x128xf32>
    %77 = math.tanh %71 : vector<2x128xf32>
    %78 = vector.extract_strided_slice %76 {offsets = [0, 0], sizes = [2, 32], strides = [1, 1]} : vector<2x128xf32> to vector<2x32xf32>
    %79 = vector.extract_strided_slice %76 {offsets = [0, 32], sizes = [2, 32], strides = [1, 1]} : vector<2x128xf32> to vector<2x32xf32>
    %80 = vector.extract_strided_slice %77 {offsets = [0, 64], sizes = [2, 32], strides = [1, 1]} : vector<2x128xf32> to vector<2x32xf32>
    %81 = vector.extract_strided_slice %76 {offsets = [0, 96], sizes = [2, 32], strides = [1, 1]} : vector<2x128xf32> to vector<2x32xf32>
    %82 = arith.mulf %79, %65 : vector<2x32xf32>
    %83 = arith.mulf %78, %80 : vector<2x32xf32>
    %84 = arith.addf %82, %83 : vector<2x32xf32>
    %85 = math.tanh %84 : vector<2x32xf32>
    %86 = arith.mulf %81, %85 : vector<2x32xf32>
    %87 = vector.extract_strided_slice %7 {offsets = [0, 4, 0], sizes = [2, 1, 128], strides = [1, 1, 1]} : vector<2x8x128xf32> to vector<2x1x128xf32>
    %88 = vector.shape_cast %87 : vector<2x1x128xf32> to vector<2x128xf32>
    %cst_18 = arith.constant dense<0.000000e+00> : vector<2x128xf32>
    %89 = tpu.matmul %86, %8, %cst_18 {dimension_numbers = #tpu.dot_dimension_numbers<[1], [0], [0], [1], [0, 0, 1, 1], [], []>} : vector<2x32xf32>, vector<32x128xf32>, vector<2x128xf32> -> vector<2x128xf32>
    %90 = arith.addf %88, %89 : vector<2x128xf32>
    %91 = arith.negf %90 : vector<2x128xf32>
    %92 = math.exp %91 : vector<2x128xf32>
    %cst_19 = arith.constant 1.000000e+00 : f32
    %93 = vector.broadcast %cst_19 : f32 to vector<2x128xf32>
    %94 = arith.addf %93, %92 : vector<2x128xf32>
    %95 = arith.divf %93, %94 : vector<2x128xf32>
    %96 = math.tanh %90 : vector<2x128xf32>
    %97 = vector.extract_strided_slice %95 {offsets = [0, 0], sizes = [2, 32], strides = [1, 1]} : vector<2x128xf32> to vector<2x32xf32>
    %98 = vector.extract_strided_slice %95 {offsets = [0, 32], sizes = [2, 32], strides = [1, 1]} : vector<2x128xf32> to vector<2x32xf32>
    %99 = vector.extract_strided_slice %96 {offsets = [0, 64], sizes = [2, 32], strides = [1, 1]} : vector<2x128xf32> to vector<2x32xf32>
    %100 = vector.extract_strided_slice %95 {offsets = [0, 96], sizes = [2, 32], strides = [1, 1]} : vector<2x128xf32> to vector<2x32xf32>
    %101 = arith.mulf %98, %84 : vector<2x32xf32>
    %102 = arith.mulf %97, %99 : vector<2x32xf32>
    %103 = arith.addf %101, %102 : vector<2x32xf32>
    %104 = math.tanh %103 : vector<2x32xf32>
    %105 = arith.mulf %100, %104 : vector<2x32xf32>
    %106 = vector.extract_strided_slice %7 {offsets = [0, 5, 0], sizes = [2, 1, 128], strides = [1, 1, 1]} : vector<2x8x128xf32> to vector<2x1x128xf32>
    %107 = vector.shape_cast %106 : vector<2x1x128xf32> to vector<2x128xf32>
    %cst_20 = arith.constant dense<0.000000e+00> : vector<2x128xf32>
    %108 = tpu.matmul %105, %8, %cst_20 {dimension_numbers = #tpu.dot_dimension_numbers<[1], [0], [0], [1], [0, 0, 1, 1], [], []>} : vector<2x32xf32>, vector<32x128xf32>, vector<2x128xf32> -> vector<2x128xf32>
    %109 = arith.addf %107, %108 : vector<2x128xf32>
    %110 = arith.negf %109 : vector<2x128xf32>
    %111 = math.exp %110 : vector<2x128xf32>
    %cst_21 = arith.constant 1.000000e+00 : f32
    %112 = vector.broadcast %cst_21 : f32 to vector<2x128xf32>
    %113 = arith.addf %112, %111 : vector<2x128xf32>
    %114 = arith.divf %112, %113 : vector<2x128xf32>
    %115 = math.tanh %109 : vector<2x128xf32>
    %116 = vector.extract_strided_slice %114 {offsets = [0, 0], sizes = [2, 32], strides = [1, 1]} : vector<2x128xf32> to vector<2x32xf32>
    %117 = vector.extract_strided_slice %114 {offsets = [0, 32], sizes = [2, 32], strides = [1, 1]} : vector<2x128xf32> to vector<2x32xf32>
    %118 = vector.extract_strided_slice %115 {offsets = [0, 64], sizes = [2, 32], strides = [1, 1]} : vector<2x128xf32> to vector<2x32xf32>
    %119 = vector.extract_strided_slice %114 {offsets = [0, 96], sizes = [2, 32], strides = [1, 1]} : vector<2x128xf32> to vector<2x32xf32>
    %120 = arith.mulf %117, %103 : vector<2x32xf32>
    %121 = arith.mulf %116, %118 : vector<2x32xf32>
    %122 = arith.addf %120, %121 : vector<2x32xf32>
    %123 = math.tanh %122 : vector<2x32xf32>
    %124 = arith.mulf %119, %123 : vector<2x32xf32>
    %125 = vector.extract_strided_slice %7 {offsets = [0, 6, 0], sizes = [2, 1, 128], strides = [1, 1, 1]} : vector<2x8x128xf32> to vector<2x1x128xf32>
    %126 = vector.shape_cast %125 : vector<2x1x128xf32> to vector<2x128xf32>
    %cst_22 = arith.constant dense<0.000000e+00> : vector<2x128xf32>
    %127 = tpu.matmul %124, %8, %cst_22 {dimension_numbers = #tpu.dot_dimension_numbers<[1], [0], [0], [1], [0, 0, 1, 1], [], []>} : vector<2x32xf32>, vector<32x128xf32>, vector<2x128xf32> -> vector<2x128xf32>
    %128 = arith.addf %126, %127 : vector<2x128xf32>
    %129 = arith.negf %128 : vector<2x128xf32>
    %130 = math.exp %129 : vector<2x128xf32>
    %cst_23 = arith.constant 1.000000e+00 : f32
    %131 = vector.broadcast %cst_23 : f32 to vector<2x128xf32>
    %132 = arith.addf %131, %130 : vector<2x128xf32>
    %133 = arith.divf %131, %132 : vector<2x128xf32>
    %134 = math.tanh %128 : vector<2x128xf32>
    %135 = vector.extract_strided_slice %133 {offsets = [0, 0], sizes = [2, 32], strides = [1, 1]} : vector<2x128xf32> to vector<2x32xf32>
    %136 = vector.extract_strided_slice %133 {offsets = [0, 32], sizes = [2, 32], strides = [1, 1]} : vector<2x128xf32> to vector<2x32xf32>
    %137 = vector.extract_strided_slice %134 {offsets = [0, 64], sizes = [2, 32], strides = [1, 1]} : vector<2x128xf32> to vector<2x32xf32>
    %138 = vector.extract_strided_slice %133 {offsets = [0, 96], sizes = [2, 32], strides = [1, 1]} : vector<2x128xf32> to vector<2x32xf32>
    %139 = arith.mulf %136, %122 : vector<2x32xf32>
    %140 = arith.mulf %135, %137 : vector<2x32xf32>
    %141 = arith.addf %139, %140 : vector<2x32xf32>
    %142 = math.tanh %141 : vector<2x32xf32>
    %143 = arith.mulf %138, %142 : vector<2x32xf32>
    %144 = vector.extract_strided_slice %7 {offsets = [0, 7, 0], sizes = [2, 1, 128], strides = [1, 1, 1]} : vector<2x8x128xf32> to vector<2x1x128xf32>
    %145 = vector.shape_cast %144 : vector<2x1x128xf32> to vector<2x128xf32>
    %cst_24 = arith.constant dense<0.000000e+00> : vector<2x128xf32>
    %146 = tpu.matmul %143, %8, %cst_24 {dimension_numbers = #tpu.dot_dimension_numbers<[1], [0], [0], [1], [0, 0, 1, 1], [], []>} : vector<2x32xf32>, vector<32x128xf32>, vector<2x128xf32> -> vector<2x128xf32>
    %147 = arith.addf %145, %146 : vector<2x128xf32>
    %148 = arith.negf %147 : vector<2x128xf32>
    %149 = math.exp %148 : vector<2x128xf32>
    %cst_25 = arith.constant 1.000000e+00 : f32
    %150 = vector.broadcast %cst_25 : f32 to vector<2x128xf32>
    %151 = arith.addf %150, %149 : vector<2x128xf32>
    %152 = arith.divf %150, %151 : vector<2x128xf32>
    %153 = math.tanh %147 : vector<2x128xf32>
    %154 = vector.extract_strided_slice %152 {offsets = [0, 0], sizes = [2, 32], strides = [1, 1]} : vector<2x128xf32> to vector<2x32xf32>
    %155 = vector.extract_strided_slice %152 {offsets = [0, 32], sizes = [2, 32], strides = [1, 1]} : vector<2x128xf32> to vector<2x32xf32>
    %156 = vector.extract_strided_slice %153 {offsets = [0, 64], sizes = [2, 32], strides = [1, 1]} : vector<2x128xf32> to vector<2x32xf32>
    %157 = vector.extract_strided_slice %152 {offsets = [0, 96], sizes = [2, 32], strides = [1, 1]} : vector<2x128xf32> to vector<2x32xf32>
    %158 = arith.mulf %155, %141 : vector<2x32xf32>
    %159 = arith.mulf %154, %156 : vector<2x32xf32>
    %160 = arith.addf %158, %159 : vector<2x32xf32>
    %161 = math.tanh %160 : vector<2x32xf32>
    %162 = arith.mulf %157, %161 : vector<2x32xf32>
    %c0_26 = arith.constant 0 : index
    %c0_27 = arith.constant 0 : index
    %163 = vector.load %arg5[%c0_26, %c0_27] : memref<32x16xf32, #tpu.memory_space<vmem>>, vector<32x16xf32>
    %cst_28 = arith.constant dense<0.000000e+00> : vector<2x16xf32>
    %164 = tpu.matmul %162, %163, %cst_28 {dimension_numbers = #tpu.dot_dimension_numbers<[1], [0], [0], [1], [0, 0, 1, 1], [], []>} : vector<2x32xf32>, vector<32x16xf32>, vector<2x16xf32> -> vector<2x16xf32>
    %c0_29 = arith.constant 0 : index
    %c0_30 = arith.constant 0 : index
    %165 = vector.load %arg6[%c0_29, %c0_30] : memref<1x16xf32, #tpu.memory_space<vmem>>, vector<1x16xf32>
    %166 = vector.broadcast %165 : vector<1x16xf32> to vector<2x16xf32>
    %167 = arith.addf %164, %166 : vector<2x16xf32>
    %c0_31 = arith.constant 0 : index
    %c0_32 = arith.constant 0 : index
    %168 = vector.load %arg7[%c0_31, %c0_32] : memref<2x16xf32, #tpu.memory_space<vmem>>, vector<2x16xf32>
    tpu.vector_store %arg7[%c0_31, %c0_32], %167 {strides = array<i32>} : memref<2x16xf32, #tpu.memory_space<vmem>>, vector<2x16xf32>,
    return
  }
  func.func @transform_0(%arg0: i32) -> (i32, i32, i32) {
    %c0_i32 = arith.constant 0 : i32
    %c0_i32_0 = arith.constant 0 : i32
    %c0_i32_1 = arith.constant 0 : i32
    %c0_i32_2 = arith.constant 0 : i32
    return %c0_i32, %c0_i32_0, %c0_i32_1 : i32, i32, i32
  }
  func.func @transform_1(%arg0: i32) -> (i32, i32) {
    %c0_i32 = arith.constant 0 : i32
    %c0_i32_0 = arith.constant 0 : i32
    %c0_i32_1 = arith.constant 0 : i32
    return %c0_i32, %c0_i32_0 : i32, i32
  }
  func.func @transform_2(%arg0: i32) -> (i32, i32) {
    %c0_i32 = arith.constant 0 : i32
    %c0_i32_0 = arith.constant 0 : i32
    %c0_i32_1 = arith.constant 0 : i32
    return %c0_i32, %c0_i32_0 : i32, i32
  }
  func.func @transform_3(%arg0: i32) -> (i32, i32) {
    %c0_i32 = arith.constant 0 : i32
    %c0_i32_0 = arith.constant 0 : i32
    %c0_i32_1 = arith.constant 0 : i32
    return %c0_i32, %c0_i32_0 : i32, i32
  }
  func.func @transform_4(%arg0: i32) -> (i32, i32) {
    %c0_i32 = arith.constant 0 : i32
    %c0_i32_0 = arith.constant 0 : i32
    %c0_i32_1 = arith.constant 0 : i32
    return %c0_i32, %c0_i32_0 : i32, i32
  }
  func.func @transform_5(%arg0: i32) -> (i32, i32) {
    %c0_i32 = arith.constant 0 : i32
    %c0_i32_0 = arith.constant 0 : i32
    %c0_i32_1 = arith.constant 0 : i32
    return %c0_i32, %c0_i32_0 : i32, i32
  }
  func.func @transform_6(%arg0: i32) -> (i32, i32) {
    %c0_i32 = arith.constant 0 : i32
    %c0_i32_0 = arith.constant 0 : i32
    %c0_i32_1 = arith.constant 0 : i32
    return %c0_i32, %c0_i32_0 : i32, i32
  }
}

</mosaic_0001>

<bundles_post_ra>
// kernel: tpu_custom_call.1
= control target key start
LH: loop header
LB: loop body
LE: loop exit
PB: predicated region body
PF: predicated region fallthrough
CT: control target
= control target key end

     0   :  { %vm41_vm0 = vcmask 1043456   ;;  %v1729_v3 = vmov 0.0|0.0   ;;  %vm34_vm1 = vcmask 31744   ;;  %s1970_s0 = inlined_call_operand.vmem [shape: f32[2,8,4], index: 0, kind: input, shape index: {}]   ;;  %s1971_s1 = inlined_call_operand.vmem [shape: f32[4,128], index: 1, kind: input, shape index: {}]   ;;  %s1972_s2 = inlined_call_operand.vmem [shape: f32[32,128], index: 2, kind: input, shape index: {}]   ;;  %s1973_s3 = inlined_call_operand.vmem [shape: f32[1,128], index: 3, kind: input, shape index: {}]   ;;  %s1974_s4 = inlined_call_operand.vmem [shape: f32[32,16], index: 4, kind: input, shape index: {}]   ;;  %s1975_s5 = inlined_call_operand.vmem [shape: f32[1,16], index: 5, kind: input, shape index: {}]   ;;  %s1976_s6 = inlined_call_operand.hbm [shape: f32[2,16], index: 6, kind: output, shape index: {}]  }
   0x1   :  { %v120_v0 = vld [vmem:[%s1972_s2] sm:$0xff]  ;;  %v121_v1 = vld [vmem:[%s1972_s2 + $0x8] sm:$0xff]  ;;  %1517 = vmatprep.subr.bf16.mxu1 %v1729_v3  ;;  %v122_v7 = vld [vmem:[%s1972_s2 + $0x10] sm:$0xff] }
   0x2   :  { %v26_v2 = vld [vmem:[%s1971_s1] sm:$0xf]  ;;  %v1780_v4 = vpack.c.bf16 %v121_v1, %v120_v0  ;;  %v25_v6 = vld [vmem:[%s1970_s0 + $0x8] sm:$0xff]  ;;  %v123_v8 = vld [vmem:[%s1972_s2 + $0x18] sm:$0xff] }
   0x3   :  { %1413 = vmatprep.subr.msk.mxu0 %vm41_vm0, %v26_v2  ;;  %v24_v5 = vld [vmem:[%s1970_s0] sm:$0xff] }
   0x4   :  { %1414 = vmatpush3.msk.msra.mxu0 %vm41_vm0, %v26_v2  ;;  %1415 = vmatprep.mubr.msk.f32.mxu0 %vm34_vm1, %v24_v5 }
   0x5   :  { %11 = vsyncpa [#allocation3], 0  ;;  %1519 = vmatpush3.bf16.msra.mxu1 %v1780_v4  ;;  %1416 = vmatmul.mubr.msk.f32.vlgmr.msra.gmra.mrb[0].mxu0 %vm34_vm1, %v25_v6  ;;  %v1795_v9 = vpack.c.bf16 %v123_v8, %v122_v7  ;;  %vm1730_vm2 = vmmov 0   ;;  %v1731_v10 = vmov 0.0   ;;  %v1336_v13 = vld [vmem:[%s1973_s3] ss:$0 sm:$0xff] }
   0x6   :  { %1520 = vmatprep.subr.bf16.mxu1 %v1729_v3  ;;  %1426 = vmatprep.mubr.msk.f32.mxu1 %vm1730_vm2, %v1731_v10  ;;  %s1732_s10 = smov 64   ;;  %s1733_s3 = smov 32   ;;  %vm255_vm3 = vcmask 1041409   ;;  %vm124_vm4 = vcmask 261120   ;;  %vm1320_vm5 = vcmask 123904  }
   0x7   :  { %1523 = vmatprep.subr.bf16.mxu0 %v1729_v3  ;;  %1437 = vmatprep.mubr.msk.f32.mxu0 %vm1730_vm2, %v1731_v10  ;;  %s1734_s20 = smov [#allocation2]  }
   0x8   :  { %1525 = vmatpush3.bf16.msra.mxu0 %v1780_v4  ;;  %s1328_s21 = sshll.u32 %s1734_s20, 4  ;;  %s1329_s21 = int_to_ptr.vmem [resolvable:$true] %s1328_s21 }
   0x9   :  { %1522 = vmatpush3.bf16.msra.mxu1 %v1795_v9  ;;  %1526 = vmatprep.subr.bf16.mxu0 %v1729_v3  ;;  %s1705_s22 = scalar_lea.vmem %s1329_s21, 32  ;;  %p1710_p1 = scmp.lt.s32.totalorder %s1329_s21, %s1329_s21 }
   0xa   :  { %1529 = vmatprep.subr.bf16.mxu1 %v1729_v3  ;;  %p1706_p0 = scmp.ne.s32.totalorder %s1329_s21, %s1705_s22  ;;  %p1711_p2 = scmp.lt.s32.totalorder %s1705_s22, %s1705_s22 }
   0xc   :  { %1427 = vmatmul.mubr.f32.vlgmr.msra.gmra.mrb[0].mxu1 %v1731_v10  ;;  %1528 = vmatpush3.bf16.msra.mxu0 %v1795_v9  ;;  %p1712_p3 = por %p1711_p2, %p1710_p1 }
   0xd   :  { %1531 = vmatpush3.bf16.msra.mxu1 %v1780_v4  ;;  %1448 = vmatprep.mubr.msk.f32.mxu1 %vm1730_vm2, %v1731_v10 }
   0xe   :  { %1532 = vmatprep.subr.bf16.mxu1 %v1729_v3  ;;  %1535 = vmatprep.subr.bf16.mxu0 %v1729_v3  ;;  %p1713_p4 = pnand %p1712_p3, %p1706_p0 }
  0x11   :  { %1534 = vmatpush3.bf16.msra.mxu1 %v1795_v9 }
  0x12   :  { %1541 = vmatprep.subr.bf16.mxu1 %v1729_v3 }
  0xd8   :  { %v1417_v11 = vpop.f32.mrb[0].mxu0 }
  0xd9   :  { %v111_v12 = vpop.f32.mrb[1].mxu0  ;;  %v1819_v14 = vadd.f32 %v1417_v11, %v1336_v13 }
  0xda   :  { %v1821_v18 = vadd.f32 %v1336_v13, %v111_v12 }
  0xdf   :  { %v194_v15 = vpop.f32.mrb[0].mxu1 }
  0xe0   :  { %v199_v16 = vrot.slane %v194_v15, 1  ;;  %v1428_v17 = vpop.f32.mrb[1].mxu1  ;;  %v202_v20 = vadd.f32 %v194_v15, %v1821_v18 }
  0xe2   :  { %v203_v19 = vadd.f32 %v199_v16, %v1819_v14  ;;  %v1340_v24 = vmul.f32 -1.442695, %v202_v20 }
  0xe4   :  { %1577 = vtanh.f32 %v203_v19  ;;  %v1341_v23 = vmul.f32 -1.442695, %v203_v19 }
  0xe5   :  { %1579 = vtanh.f32 %v202_v20 }
  0xe6   :  { %1581 = vpow2.f32 %v1341_v23 }
  0xe7   :  { %1583 = vpow2.f32 %v1340_v24 }
  0xee   :  { %v1578_v21 = vpop.eup %1577 }
  0xef   :  { %224 = vrot.lane.b32.xlu0 %v1578_v21, %s1732_s10  ;;  %v1580_v22 = vpop.eup %1579 }
  0xf0   :  { %v1582_v25 = vpop.eup %1581 }
  0xf1   :  { %v211_v26 = vadd.f32 1.0, %v1582_v25  ;;  %v1584_v27 = vpop.eup %1583 }
  0xf2   :  { %v210_v28 = vadd.f32 1.0, %v1584_v27 }
  0xf3   :  { %222 = vrot.lane.b32.xlu0 %v1580_v22, %s1732_s10  ;;  %1585 = vrcp.f32 %v211_v26 }
  0xf4   :  { %1587 = vrcp.f32 %v210_v28 }
  0xfd   :  { %v1586_v29 = vpop.eup %1585 }
  0xfe   :  { %v1588_v32 = vpop.eup %1587  ;;  %v219_v35 = vmul.f32 0.0, %v1586_v29 }
  0xff   :  { %v218_v38 = vmul.f32 0.0, %v1588_v32 }
 0x161   :  { %v225_v30 = vpop.permute.xlu0 %224 }
 0x162   :  { %v229_v31 = vmul.f32 %v1586_v29, %v225_v30 }
 0x164   :  { %234 = vrot.lane.b32.xlu1 %v229_v31, %s1733_s3 }
 0x165   :  { %v223_v33 = vpop.permute.xlu0 %222 }
 0x166   :  { %v228_v34 = vmul.f32 %v1588_v32, %v223_v33 }
 0x168   :  { %232 = vrot.lane.b32.xlu1 %v228_v34, %s1733_s3 }
 0x1d6   :  { %v235_v36 = vpop.permute.xlu1 %234 }
 0x1d7   :  { %v239_v37 = vadd.f32 %v235_v36, %v219_v35 }
 0x1d9   :  { %1589 = vtanh.f32 %v239_v37  ;;  %v354_v7 = vrot.slane %v239_v37, 7 }
 0x1da   :  { %v233_v39 = vpop.permute.xlu1 %232 }
 0x1db   :  { %v238_v40 = vadd.f32 %v233_v39, %v218_v38 }
 0x1dd   :  { %1591 = vtanh.f32 %v238_v40  ;;  %v353_v11 = vrot.slane %v238_v40, 7 }
 0x1e3   :  { %v1590_v41 = vpop.eup %1589 }
 0x1e4   :  { %246 = vrot.lane.b32.xlu0 %v1590_v41, %s1732_s10 }
 0x1e7   :  { %v1592_v42 = vpop.eup %1591 }
 0x1e8   :  { %244 = vrot.lane.b32.xlu1 %v1592_v42, %s1732_s10 }
 0x256   :  { %v247_v43 = vpop.permute.xlu0 %246 }
 0x257   :  { %v251_v44 = vmul.f32 %v1586_v29, %v247_v43 }
 0x259   :  { %v254_v46 = vrot.slane %v251_v44, 7 }
 0x25a   :  { %v245_v45 = vpop.permute.xlu1 %244 }
 0x25b   :  { %v250_v47 = vmul.f32 %v1588_v32, %v245_v45 }
 0x25d   :  { %v256_v48 = vsel %vm255_vm3, %v254_v46, %v250_v47 }
 0x25e   :  { %257 = vrot.lane.b32.xlu0 %v256_v48, %s1733_s3 }
 0x2d0   :  { %v258_v49 = vpop.permute.xlu0 %257 }
 0x2d1   :  { %1438 = vmatmul.mubr.msk.f32.vlgmr.msra.gmra.mrb[2].mxu0 %vm124_vm4, %v258_v49 }
 0x2d2   :  { %1537 = vmatpush3.bf16.msra.mxu0 %v1780_v4  ;;  %1459 = vmatprep.mubr.msk.f32.mxu0 %vm1730_vm2, %v1731_v10 }
 0x2d3   :  { %1538 = vmatprep.subr.bf16.mxu0 %v1729_v3 }
 0x2d6   :  { %1540 = vmatpush3.bf16.msra.mxu0 %v1795_v9 }
 0x2d7   :  { %1547 = vmatprep.subr.bf16.mxu0 %v1729_v3 }
 0x3a4   :  { %v327_v50 = vpop.f32.mrb[2].mxu0 }
 0x3a5   :  { %v332_v51 = vrot.slane %v327_v50, 7  ;;  %v336_v52 = vadd.f32 %v327_v50, %v1819_v14  ;;  %v1439_v53 = vpop.f32.mrb[3].mxu0 }
 0x3a7   :  { %v335_v54 = vadd.f32 %v332_v51, %v1821_v18  ;;  %1593 = vtanh.f32 %v336_v52  ;;  %v1344_v57 = vmul.f32 -1.442695, %v336_v52 }
 0x3a9   :  { %1595 = vtanh.f32 %v335_v54  ;;  %v1343_v58 = vmul.f32 -1.442695, %v335_v54 }
 0x3aa   :  { %1597 = vpow2.f32 %v1344_v57 }
 0x3ab   :  { %1599 = vpow2.f32 %v1343_v58 }
 0x3b1   :  { %v1594_v55 = vpop.eup %1593 }
 0x3b2   :  { %363 = vrot.lane.b32.xlu0 %v1594_v55, %s1732_s10 }
 0x3b3   :  { %v1596_v56 = vpop.eup %1595 }
 0x3b4   :  { %361 = vrot.lane.b32.xlu1 %v1596_v56, %s1732_s10  ;;  %v1598_v59 = vpop.eup %1597 }
 0x3b5   :  { %v1600_v60 = vpop.eup %1599  ;;  %v344_v61 = vadd.f32 1.0, %v1598_v59 }
 0x3b6   :  { %v343_v62 = vadd.f32 1.0, %v1600_v60 }
 0x3b7   :  { %1601 = vrcp.f32 %v344_v61 }
 0x3b8   :  { %1603 = vrcp.f32 %v343_v62 }
 0x3c1   :  { %v1602_v63 = vpop.eup %1601 }
 0x3c2   :  { %v1604_v2 = vpop.eup %1603  ;;  %v358_v8 = vmul.f32 %v1602_v63, %v354_v7 }
 0x3c3   :  { %v357_v15 = vmul.f32 %v1604_v2, %v353_v11 }
 0x424   :  { %v364_v0 = vpop.permute.xlu0 %363 }
 0x425   :  { %v368_v1 = vmul.f32 %v1602_v63, %v364_v0 }
 0x426   :  { %v362_v5 = vpop.permute.xlu1 %361 }
 0x427   :  { %373 = vrot.lane.b32.xlu0 %v368_v1, %s1733_s3  ;;  %v367_v6 = vmul.f32 %v1604_v2, %v362_v5 }
 0x429   :  { %371 = vrot.lane.b32.xlu1 %v367_v6, %s1733_s3 }
 0x499   :  { %v374_v12 = vpop.permute.xlu0 %373 }
 0x49a   :  { %v378_v13 = vadd.f32 %v374_v12, %v358_v8 }
 0x49b   :  { %v372_v16 = vpop.permute.xlu1 %371 }
 0x49c   :  { %1605 = vtanh.f32 %v378_v13  ;;  %v377_v17 = vadd.f32 %v372_v16, %v357_v15  ;;  %v493_v49 = vrot.slane %v378_v13, 7 }
 0x49e   :  { %1607 = vtanh.f32 %v377_v17  ;;  %v492_v48 = vrot.slane %v377_v17, 7 }
 0x4a6   :  { %v1606_v19 = vpop.eup %1605 }
 0x4a7   :  { %385 = vrot.lane.b32.xlu0 %v1606_v19, %s1732_s10 }
 0x4a8   :  { %v1608_v20 = vpop.eup %1607 }
 0x4a9   :  { %383 = vrot.lane.b32.xlu1 %v1608_v20, %s1732_s10 }
 0x519   :  { %v386_v21 = vpop.permute.xlu0 %385 }
 0x51a   :  { %v390_v24 = vmul.f32 %v1602_v63, %v386_v21 }
 0x51b   :  { %v384_v22 = vpop.permute.xlu1 %383 }
 0x51c   :  { %v389_v23 = vmul.f32 %v1604_v2, %v384_v22 }
 0x51e   :  { %v393_v25 = vrot.slane %v389_v23, 1 }
 0x520   :  { %v394_v26 = vsel %vm255_vm3, %v390_v24, %v393_v25 }
 0x521   :  { %395 = vrot.lane.b32.xlu1 %v394_v26, %s1733_s3 }
 0x593   :  { %v396_v27 = vpop.permute.xlu1 %395 }
 0x594   :  { %1449 = vmatmul.mubr.msk.f32.vlgmr.msra.gmra.mrb[2].mxu1 %vm124_vm4, %v396_v27 }
 0x595   :  { %1543 = vmatpush3.bf16.msra.mxu1 %v1780_v4  ;;  %1470 = vmatprep.mubr.msk.f32.mxu1 %vm1730_vm2, %v1731_v10 }
 0x596   :  { %1544 = vmatprep.subr.bf16.mxu1 %v1729_v3 }
 0x599   :  { %1546 = vmatpush3.bf16.msra.mxu1 %v1795_v9 }
 0x59a   :  { %1553 = vmatprep.subr.bf16.mxu1 %v1729_v3 }
 0x667   :  { %v465_v28 = vpop.f32.mrb[2].mxu1 }
 0x668   :  { %v470_v29 = vrot.slane %v465_v28, 6  ;;  %v471_v30 = vrot.slane %v465_v28, 7  ;;  %v1450_v31 = vpop.f32.mrb[3].mxu1 }
 0x66a   :  { %v474_v32 = vadd.f32 %v470_v29, %v1821_v18  ;;  %v475_v33 = vadd.f32 %v471_v30, %v1819_v14 }
 0x66c   :  { %1609 = vtanh.f32 %v474_v32  ;;  %v1346_v36 = vmul.f32 -1.442695, %v474_v32  ;;  %v1347_v37 = vmul.f32 -1.442695, %v475_v33 }
 0x66d   :  { %1611 = vtanh.f32 %v475_v33 }
 0x66e   :  { %1613 = vpow2.f32 %v1346_v36 }
 0x66f   :  { %1615 = vpow2.f32 %v1347_v37 }
 0x676   :  { %v1610_v34 = vpop.eup %1609 }
 0x677   :  { %v1612_v35 = vpop.eup %1611  ;;  %500 = vrot.lane.b32.xlu0 %v1610_v34, %s1732_s10 }
 0x678   :  { %502 = vrot.lane.b32.xlu1 %v1612_v35, %s1732_s10  ;;  %v1614_v38 = vpop.eup %1613 }
 0x679   :  { %v1616_v39 = vpop.eup %1615  ;;  %v482_v40 = vadd.f32 1.0, %v1614_v38 }
 0x67a   :  { %v483_v41 = vadd.f32 1.0, %v1616_v39 }
 0x67b   :  { %1617 = vrcp.f32 %v482_v40 }
 0x67c   :  { %1619 = vrcp.f32 %v483_v41 }
 0x685   :  { %v1618_v42 = vpop.eup %1617 }
 0x686   :  { %v1620_v44 = vpop.eup %1619  ;;  %v496_v50 = vmul.f32 %v1618_v42, %v492_v48 }
 0x687   :  { %v497_v51 = vmul.f32 %v1620_v44, %v493_v49 }
 0x6e9   :  { %v501_v43 = vpop.permute.xlu0 %500 }
 0x6ea   :  { %v503_v45 = vpop.permute.xlu1 %502  ;;  %v506_v46 = vmul.f32 %v1618_v42, %v501_v43 }
 0x6eb   :  { %v507_v47 = vmul.f32 %v1620_v44, %v503_v45 }
 0x6ec   :  { %510 = vrot.lane.b32.xlu0 %v506_v46, %s1733_s3 }
 0x6ed   :  { %512 = vrot.lane.b32.xlu1 %v507_v47, %s1733_s3 }
 0x75e   :  { %v511_v52 = vpop.permute.xlu0 %510 }
 0x75f   :  { %v513_v53 = vpop.permute.xlu1 %512  ;;  %v516_v54 = vadd.f32 %v511_v52, %v496_v50 }
 0x760   :  { %v517_v55 = vadd.f32 %v513_v53, %v497_v51 }
 0x761   :  { %1621 = vtanh.f32 %v516_v54  ;;  %v632_v28 = vrot.slane %v516_v54, 7 }
 0x762   :  { %1623 = vtanh.f32 %v517_v55  ;;  %v633_v29 = vrot.slane %v517_v55, 7 }
 0x76b   :  { %v1622_v56 = vpop.eup %1621 }
 0x76c   :  { %v1624_v57 = vpop.eup %1623  ;;  %522 = vrot.lane.b32.xlu0 %v1622_v56, %s1732_s10 }
 0x76d   :  { %524 = vrot.lane.b32.xlu1 %v1624_v57, %s1732_s10 }
 0x7de   :  { %v523_v58 = vpop.permute.xlu0 %522 }
 0x7df   :  { %v525_v59 = vpop.permute.xlu1 %524  ;;  %v528_v60 = vmul.f32 %v1618_v42, %v523_v58 }
 0x7e0   :  { %v529_v61 = vmul.f32 %v1620_v44, %v525_v59 }
 0x7e1   :  { %v532_v62 = vrot.slane %v528_v60, 2 }
 0x7e2   :  { %v533_v63 = vrot.slane %v529_v61, 1 }
 0x7e4   :  { %v534_v0 = vsel %vm255_vm3, %v533_v63, %v532_v62 }
 0x7e5   :  { %535 = vrot.lane.b32.xlu0 %v534_v0, %s1733_s3 }
 0x857   :  { %v536_v1 = vpop.permute.xlu0 %535 }
 0x858   :  { %1460 = vmatmul.mubr.msk.f32.vlgmr.msra.gmra.mrb[4].mxu0 %vm124_vm4, %v536_v1 }
 0x859   :  { %1549 = vmatpush3.bf16.msra.mxu0 %v1780_v4  ;;  %1481 = vmatprep.mubr.msk.f32.mxu0 %vm1730_vm2, %v1731_v10 }
 0x85a   :  { %1550 = vmatprep.subr.bf16.mxu0 %v1729_v3 }
 0x85d   :  { %1552 = vmatpush3.bf16.msra.mxu0 %v1795_v9 }
 0x85e   :  { %1559 = vmatprep.subr.bf16.mxu0 %v1729_v3 }
 0x92b   :  { %v605_v2 = vpop.f32.mrb[4].mxu0 }
 0x92c   :  { %v610_v5 = vrot.slane %v605_v2, 5  ;;  %v611_v6 = vrot.slane %v605_v2, 6  ;;  %v1461_v7 = vpop.f32.mrb[5].mxu0 }
 0x92e   :  { %v614_v8 = vadd.f32 %v610_v5, %v1821_v18  ;;  %v615_v11 = vadd.f32 %v611_v6, %v1819_v14 }
 0x930   :  { %1625 = vtanh.f32 %v614_v8  ;;  %v1349_v15 = vmul.f32 -1.442695, %v614_v8  ;;  %v1350_v16 = vmul.f32 -1.442695, %v615_v11 }
 0x931   :  { %1627 = vtanh.f32 %v615_v11 }
 0x932   :  { %1629 = vpow2.f32 %v1349_v15 }
 0x933   :  { %1631 = vpow2.f32 %v1350_v16 }
 0x93a   :  { %v1626_v12 = vpop.eup %1625 }
 0x93b   :  { %v1628_v13 = vpop.eup %1627  ;;  %640 = vrot.lane.b32.xlu1 %v1626_v12, %s1732_s10 }
 0x93c   :  { %642 = vrot.lane.b32.xlu0 %v1628_v13, %s1732_s10  ;;  %v1630_v17 = vpop.eup %1629 }
 0x93d   :  { %v1632_v19 = vpop.eup %1631  ;;  %v622_v20 = vadd.f32 1.0, %v1630_v17 }
 0x93e   :  { %v623_v21 = vadd.f32 1.0, %v1632_v19 }
 0x93f   :  { %1633 = vrcp.f32 %v622_v20 }
 0x940   :  { %1635 = vrcp.f32 %v623_v21 }
 0x949   :  { %v1634_v22 = vpop.eup %1633 }
 0x94a   :  { %v1636_v24 = vpop.eup %1635  ;;  %v636_v30 = vmul.f32 %v1634_v22, %v632_v28 }
 0x94b   :  { %v637_v31 = vmul.f32 %v1636_v24, %v633_v29 }
 0x9ad   :  { %v641_v23 = vpop.permute.xlu1 %640 }
 0x9ae   :  { %v643_v25 = vpop.permute.xlu0 %642  ;;  %v646_v26 = vmul.f32 %v1634_v22, %v641_v23 }
 0x9af   :  { %v647_v27 = vmul.f32 %v1636_v24, %v643_v25 }
 0x9b0   :  { %650 = vrot.lane.b32.xlu1 %v646_v26, %s1733_s3 }
 0x9b1   :  { %652 = vrot.lane.b32.xlu0 %v647_v27, %s1733_s3 }
 0xa22   :  { %v651_v32 = vpop.permute.xlu1 %650 }
 0xa23   :  { %v653_v33 = vpop.permute.xlu0 %652  ;;  %v656_v34 = vadd.f32 %v651_v32, %v636_v30 }
 0xa24   :  { %v657_v35 = vadd.f32 %v653_v33, %v637_v31 }
 0xa25   :  { %1637 = vtanh.f32 %v656_v34  ;;  %v772_v2 = vrot.slane %v656_v34, 7 }
 0xa26   :  { %1639 = vtanh.f32 %v657_v35  ;;  %v773_v5 = vrot.slane %v657_v35, 7 }
 0xa2f   :  { %v1638_v36 = vpop.eup %1637 }
 0xa30   :  { %v1640_v37 = vpop.eup %1639  ;;  %662 = vrot.lane.b32.xlu1 %v1638_v36, %s1732_s10 }
 0xa31   :  { %664 = vrot.lane.b32.xlu0 %v1640_v37, %s1732_s10 }
 0xaa2   :  { %v663_v38 = vpop.permute.xlu1 %662 }
 0xaa3   :  { %v665_v39 = vpop.permute.xlu0 %664  ;;  %v668_v40 = vmul.f32 %v1634_v22, %v663_v38 }
 0xaa4   :  { %v669_v41 = vmul.f32 %v1636_v24, %v665_v39 }
 0xaa5   :  { %v672_v42 = vrot.slane %v668_v40, 3 }
 0xaa6   :  { %v673_v43 = vrot.slane %v669_v41, 2 }
 0xaa8   :  { %v674_v44 = vsel %vm255_vm3, %v673_v43, %v672_v42 }
 0xaa9   :  { %675 = vrot.lane.b32.xlu1 %v674_v44, %s1733_s3 }
 0xb1b   :  { %v676_v45 = vpop.permute.xlu1 %675 }
 0xb1c   :  { %1471 = vmatmul.mubr.msk.f32.vlgmr.msra.gmra.mrb[4].mxu1 %vm124_vm4, %v676_v45 }
 0xb1d   :  { %1555 = vmatpush3.bf16.msra.mxu1 %v1780_v4  ;;  %1492 = vmatprep.mubr.msk.f32.mxu1 %vm1730_vm2, %v1731_v10 }
 0xb1e   :  { %1556 = vmatprep.subr.bf16.mxu1 %v1729_v3 }
 0xb21   :  { %1558 = vmatpush3.bf16.msra.mxu1 %v1795_v9 }
 0xb22   :  { %1565 = vmatprep.subr.bf16.mxu1 %v1729_v3 }
 0xbef   :  { %v745_v46 = vpop.f32.mrb[4].mxu1 }
 0xbf0   :  { %v750_v47 = vrot.slane %v745_v46, 4  ;;  %v751_v48 = vrot.slane %v745_v46, 5  ;;  %v1472_v49 = vpop.f32.mrb[5].mxu1 }
 0xbf2   :  { %v754_v50 = vadd.f32 %v750_v47, %v1821_v18  ;;  %v755_v51 = vadd.f32 %v751_v48, %v1819_v14 }
 0xbf4   :  { %1641 = vtanh.f32 %v754_v50  ;;  %v1352_v54 = vmul.f32 -1.442695, %v754_v50  ;;  %v1353_v55 = vmul.f32 -1.442695, %v755_v51 }
 0xbf5   :  { %1643 = vtanh.f32 %v755_v51 }
 0xbf6   :  { %1645 = vpow2.f32 %v1352_v54 }
 0xbf7   :  { %1647 = vpow2.f32 %v1353_v55 }
 0xbfe   :  { %v1642_v52 = vpop.eup %1641 }
 0xbff   :  { %v1644_v53 = vpop.eup %1643  ;;  %780 = vrot.lane.b32.xlu0 %v1642_v52, %s1732_s10 }
 0xc00   :  { %782 = vrot.lane.b32.xlu1 %v1644_v53, %s1732_s10  ;;  %v1646_v56 = vpop.eup %1645 }
 0xc01   :  { %v1648_v57 = vpop.eup %1647  ;;  %v762_v58 = vadd.f32 1.0, %v1646_v56 }
 0xc02   :  { %v763_v59 = vadd.f32 1.0, %v1648_v57 }
 0xc03   :  { %1649 = vrcp.f32 %v762_v58 }
 0xc04   :  { %1651 = vrcp.f32 %v763_v59 }
 0xc0d   :  { %v1650_v60 = vpop.eup %1649 }
 0xc0e   :  { %v1652_v62 = vpop.eup %1651  ;;  %v776_v6 = vmul.f32 %v1650_v60, %v772_v2 }
 0xc0f   :  { %v777_v7 = vmul.f32 %v1652_v62, %v773_v5 }
 0xc71   :  { %v781_v61 = vpop.permute.xlu0 %780 }
 0xc72   :  { %v783_v63 = vpop.permute.xlu1 %782  ;;  %v786_v0 = vmul.f32 %v1650_v60, %v781_v61 }
 0xc73   :  { %v787_v1 = vmul.f32 %v1652_v62, %v783_v63 }
 0xc74   :  { %790 = vrot.lane.b32.xlu0 %v786_v0, %s1733_s3 }
 0xc75   :  { %792 = vrot.lane.b32.xlu1 %v787_v1, %s1733_s3 }
 0xce6   :  { %v791_v8 = vpop.permute.xlu0 %790 }
 0xce7   :  { %v793_v11 = vpop.permute.xlu1 %792  ;;  %v796_v12 = vadd.f32 %v791_v8, %v776_v6 }
 0xce8   :  { %v797_v13 = vadd.f32 %v793_v11, %v777_v7 }
 0xce9   :  { %1653 = vtanh.f32 %v796_v12  ;;  %v912_v44 = vrot.slane %v796_v12, 7 }
 0xcea   :  { %1655 = vtanh.f32 %v797_v13  ;;  %v913_v45 = vrot.slane %v797_v13, 7 }
 0xcf3   :  { %v1654_v15 = vpop.eup %1653 }
 0xcf4   :  { %v1656_v16 = vpop.eup %1655  ;;  %802 = vrot.lane.b32.xlu0 %v1654_v15, %s1732_s10 }
 0xcf5   :  { %804 = vrot.lane.b32.xlu1 %v1656_v16, %s1732_s10 }
 0xd66   :  { %v803_v17 = vpop.permute.xlu0 %802 }
 0xd67   :  { %v805_v19 = vpop.permute.xlu1 %804  ;;  %v808_v20 = vmul.f32 %v1650_v60, %v803_v17 }
 0xd68   :  { %v809_v21 = vmul.f32 %v1652_v62, %v805_v19 }
 0xd69   :  { %v812_v22 = vrot.slane %v808_v20, 4 }
 0xd6a   :  { %v813_v23 = vrot.slane %v809_v21, 3 }
 0xd6c   :  { %v814_v24 = vsel %vm255_vm3, %v813_v23, %v812_v22 }
 0xd6d   :  { %815 = vrot.lane.b32.xlu0 %v814_v24, %s1733_s3 }
 0xddf   :  { %v816_v25 = vpop.permute.xlu0 %815 }
 0xde0   :  { %1482 = vmatmul.mubr.msk.f32.vlgmr.msra.gmra.mrb[6].mxu0 %vm124_vm4, %v816_v25 }
 0xde1   :  { %1561 = vmatpush3.bf16.msra.mxu0 %v1780_v4  ;;  %1503 = vmatprep.mubr.msk.f32.mxu0 %vm1730_vm2, %v1731_v10 }
 0xde2   :  { %1562 = vmatprep.subr.bf16.mxu0 %v1729_v3 }
 0xde5   :  { %1564 = vmatpush3.bf16.msra.mxu0 %v1795_v9 }
 0xeb3   :  { %v885_v26 = vpop.f32.mrb[6].mxu0 }
 0xeb4   :  { %v890_v27 = vrot.slane %v885_v26, 3  ;;  %v891_v28 = vrot.slane %v885_v26, 4  ;;  %v1483_v29 = vpop.f32.mrb[7].mxu0 }
 0xeb6   :  { %v894_v30 = vadd.f32 %v890_v27, %v1821_v18  ;;  %v895_v31 = vadd.f32 %v891_v28, %v1819_v14 }
 0xeb8   :  { %1657 = vtanh.f32 %v894_v30  ;;  %v1355_v4 = vmul.f32 -1.442695, %v894_v30  ;;  %v1356_v34 = vmul.f32 -1.442695, %v895_v31 }
 0xeb9   :  { %1659 = vtanh.f32 %v895_v31 }
 0xeba   :  { %1661 = vpow2.f32 %v1355_v4 }
 0xebb   :  { %1663 = vpow2.f32 %v1356_v34 }
 0xec2   :  { %v1658_v32 = vpop.eup %1657 }
 0xec3   :  { %v1660_v33 = vpop.eup %1659  ;;  %920 = vrot.lane.b32.xlu1 %v1658_v32, %s1732_s10 }
 0xec4   :  { %922 = vrot.lane.b32.xlu0 %v1660_v33, %s1732_s10  ;;  %v1662_v9 = vpop.eup %1661 }
 0xec5   :  { %v1664_v35 = vpop.eup %1663  ;;  %v902_v36 = vadd.f32 1.0, %v1662_v9 }
 0xec6   :  { %v903_v37 = vadd.f32 1.0, %v1664_v35 }
 0xec7   :  { %1665 = vrcp.f32 %v902_v36 }
 0xec8   :  { %1667 = vrcp.f32 %v903_v37 }
 0xed1   :  { %v1666_v38 = vpop.eup %1665 }
 0xed2   :  { %v1668_v40 = vpop.eup %1667  ;;  %v916_v46 = vmul.f32 %v1666_v38, %v912_v44 }
 0xed3   :  { %v917_v47 = vmul.f32 %v1668_v40, %v913_v45 }
 0xf35   :  { %v921_v39 = vpop.permute.xlu1 %920 }
 0xf36   :  { %v923_v41 = vpop.permute.xlu0 %922  ;;  %v926_v42 = vmul.f32 %v1666_v38, %v921_v39 }
 0xf37   :  { %v927_v43 = vmul.f32 %v1668_v40, %v923_v41 }
 0xf38   :  { %930 = vrot.lane.b32.xlu1 %v926_v42, %s1733_s3 }
 0xf39   :  { %932 = vrot.lane.b32.xlu0 %v927_v43, %s1733_s3 }
 0xfaa   :  { %v931_v48 = vpop.permute.xlu1 %930 }
 0xfab   :  { %v933_v49 = vpop.permute.xlu0 %932  ;;  %v936_v50 = vadd.f32 %v931_v48, %v916_v46 }
 0xfac   :  { %v937_v51 = vadd.f32 %v933_v49, %v917_v47 }
 0xfad   :  { %1669 = vtanh.f32 %v936_v50  ;;  %v1052_v23 = vrot.slane %v936_v50, 7 }
 0xfae   :  { %1671 = vtanh.f32 %v937_v51  ;;  %v1053_v24 = vrot.slane %v937_v51, 7 }
 0xfb7   :  { %v1670_v52 = vpop.eup %1669 }
 0xfb8   :  { %v1672_v53 = vpop.eup %1671  ;;  %942 = vrot.lane.b32.xlu1 %v1670_v52, %s1732_s10 }
 0xfb9   :  { %944 = vrot.lane.b32.xlu0 %v1672_v53, %s1732_s10 }
0x102a   :  { %v943_v54 = vpop.permute.xlu1 %942 }
0x102b   :  { %v945_v55 = vpop.permute.xlu0 %944  ;;  %v948_v56 = vmul.f32 %v1666_v38, %v943_v54 }
0x102c   :  { %v949_v57 = vmul.f32 %v1668_v40, %v945_v55 }
0x102d   :  { %v952_v58 = vrot.slane %v948_v56, 5 }
0x102e   :  { %v953_v59 = vrot.slane %v949_v57, 4 }
0x1030   :  { %v954_v60 = vsel %vm255_vm3, %v953_v59, %v952_v58 }
0x1031   :  { %955 = vrot.lane.b32.xlu1 %v954_v60, %s1733_s3 }
0x10a3   :  { %v956_v61 = vpop.permute.xlu1 %955 }
0x10a4   :  { %1493 = vmatmul.mubr.msk.f32.vlgmr.msra.gmra.mrb[6].mxu1 %vm124_vm4, %v956_v61 }
0x10a5   :  { %1514 = vmatprep.mubr.msk.f32.mxu1 %vm1730_vm2, %v1731_v10 }
0x1177   :  { %v1025_v62 = vpop.f32.mrb[6].mxu1 }
0x1178   :  { %v1030_v63 = vrot.slane %v1025_v62, 2  ;;  %v1031_v0 = vrot.slane %v1025_v62, 3  ;;  %v1494_v1 = vpop.f32.mrb[7].mxu1 }
0x1179   :  { %v1230_v1 = vld [vmem:[%s1974_s4] sm:$0xff] }
0x117a   :  { %v1034_v2 = vadd.f32 %v1030_v63, %v1821_v18  ;;  %v1035_v5 = vadd.f32 %v1031_v0, %v1819_v14 }
0x117c   :  { %1673 = vtanh.f32 %v1034_v2  ;;  %v1358_v8 = vmul.f32 -1.442695, %v1034_v2  ;;  %v1359_v11 = vmul.f32 -1.442695, %v1035_v5  ;;  %v1231_v2 = vld [vmem:[%s1974_s4 + $0x8] sm:$0xff] }
0x117d   :  { %1675 = vtanh.f32 %v1035_v5  ;;  %v1232_v5 = vld [vmem:[%s1974_s4 + $0x10] sm:$0xff] }
0x117e   :  { %1677 = vpow2.f32 %v1358_v8 }
0x117f   :  { %1679 = vpow2.f32 %v1359_v11 }
0x1186   :  { %v1674_v6 = vpop.eup %1673 }
0x1187   :  { %v1676_v7 = vpop.eup %1675  ;;  %1060 = vrot.lane.b32.xlu0 %v1674_v6, %s1732_s10  ;;  %v1566_v6 = vpack.c.bf16 %v1231_v2, %v1230_v1 }
0x1188   :  { %1062 = vrot.lane.b32.xlu1 %v1676_v7, %s1732_s10  ;;  %v1678_v10 = vpop.eup %1677  ;;  %v1233_v7 = vld [vmem:[%s1974_s4 + $0x18] sm:$0xff] }
0x1189   :  { %v1680_v12 = vpop.eup %1679  ;;  %v1042_v13 = vadd.f32 1.0, %v1678_v10  ;;  %1567 = vmatpush3.bf16.msra.mxu1 %v1566_v6  ;;  %v1569_v8 = vpack.c.bf16 %v1233_v7, %v1232_v5 }
0x118a   :  { %v1043_v15 = vadd.f32 1.0, %v1680_v12  ;;  %1568 = vmatprep.subr.bf16.mxu1 %v1729_v3  ;;  %v1363_v3 = vld [vmem:[%s1975_s5] ss:$0 sm:$0xff] }
0x118b   :  { %1681 = vrcp.f32 %v1042_v13 }
0x118c   :  { %1683 = vrcp.f32 %v1043_v15 }
0x118d   :  { %1570 = vmatpush3.bf16.msra.mxu1 %v1569_v8 }
0x1195   :  { %v1682_v16 = vpop.eup %1681 }
0x1196   :  { %v1684_v19 = vpop.eup %1683  ;;  %v1056_v25 = vmul.f32 %v1682_v16, %v1052_v23 }
0x1197   :  { %v1057_v26 = vmul.f32 %v1684_v19, %v1053_v24 }
0x11f9   :  { %v1061_v17 = vpop.permute.xlu0 %1060 }
0x11fa   :  { %v1063_v20 = vpop.permute.xlu1 %1062  ;;  %v1066_v21 = vmul.f32 %v1682_v16, %v1061_v17 }
0x11fb   :  { %v1067_v22 = vmul.f32 %v1684_v19, %v1063_v20 }
0x11fc   :  { %1070 = vrot.lane.b32.xlu0 %v1066_v21, %s1733_s3 }
0x11fd   :  { %1072 = vrot.lane.b32.xlu1 %v1067_v22, %s1733_s3 }
0x126e   :  { %v1071_v27 = vpop.permute.xlu0 %1070 }
0x126f   :  { %v1073_v28 = vpop.permute.xlu1 %1072  ;;  %v1076_v29 = vadd.f32 %v1071_v27, %v1056_v25 }
0x1270   :  { %v1077_v30 = vadd.f32 %v1073_v28, %v1057_v26 }
0x1271   :  { %1685 = vtanh.f32 %v1076_v29  ;;  %v1192_v57 = vrot.slane %v1076_v29, 7 }
0x1272   :  { %1687 = vtanh.f32 %v1077_v30  ;;  %v1193_v58 = vrot.slane %v1077_v30, 7 }
0x127b   :  { %v1686_v31 = vpop.eup %1685 }
0x127c   :  { %v1688_v32 = vpop.eup %1687  ;;  %1082 = vrot.lane.b32.xlu0 %v1686_v31, %s1732_s10 }
0x127d   :  { %1084 = vrot.lane.b32.xlu1 %v1688_v32, %s1732_s10 }
0x12ee   :  { %v1083_v33 = vpop.permute.xlu0 %1082 }
0x12ef   :  { %v1085_v4 = vpop.permute.xlu1 %1084  ;;  %v1088_v34 = vmul.f32 %v1682_v16, %v1083_v33 }
0x12f0   :  { %v1089_v9 = vmul.f32 %v1684_v19, %v1085_v4 }
0x12f1   :  { %v1092_v35 = vrot.slane %v1088_v34, 6 }
0x12f2   :  { %v1093_v36 = vrot.slane %v1089_v9, 5 }
0x12f4   :  { %v1094_v37 = vsel %vm255_vm3, %v1093_v36, %v1092_v35 }
0x12f5   :  { %1095 = vrot.lane.b32.xlu0 %v1094_v37, %s1733_s3 }
0x1367   :  { %v1096_v38 = vpop.permute.xlu0 %1095 }
0x1368   :  { %1504 = vmatmul.mubr.msk.f32.vlgmr.msra.gmra.mrb[8].mxu0 %vm124_vm4, %v1096_v38 }
0x143b   :  { %v1165_v39 = vpop.f32.mrb[8].mxu0 }
0x143c   :  { %v1170_v40 = vrot.slane %v1165_v39, 1  ;;  %v1171_v41 = vrot.slane %v1165_v39, 2  ;;  %v1505_v42 = vpop.f32.mrb[9].mxu0 }
0x143e   :  { %v1174_v43 = vadd.f32 %v1170_v40, %v1821_v18  ;;  %v1175_v44 = vadd.f32 %v1171_v41, %v1819_v14 }
0x1440   :  { %1689 = vtanh.f32 %v1174_v43  ;;  %v1361_v47 = vmul.f32 -1.442695, %v1174_v43  ;;  %v1362_v48 = vmul.f32 -1.442695, %v1175_v44 }
0x1441   :  { %1691 = vtanh.f32 %v1175_v44 }
0x1442   :  { %1693 = vpow2.f32 %v1361_v47 }
0x1443   :  { %1695 = vpow2.f32 %v1362_v48 }
0x144a   :  { %v1690_v45 = vpop.eup %1689 }
0x144b   :  { %v1692_v46 = vpop.eup %1691  ;;  %1200 = vrot.lane.b32.xlu1 %v1690_v45, %s1732_s10 }
0x144c   :  { %1202 = vrot.lane.b32.xlu0 %v1692_v46, %s1732_s10  ;;  %v1694_v49 = vpop.eup %1693 }
0x144d   :  { %v1696_v50 = vpop.eup %1695  ;;  %v1182_v51 = vadd.f32 1.0, %v1694_v49 }
0x144e   :  { %v1183_v52 = vadd.f32 1.0, %v1696_v50 }
0x144f   :  { %1697 = vrcp.f32 %v1182_v51 }
0x1450   :  { %1699 = vrcp.f32 %v1183_v52 }
0x1459   :  { %v1698_v18 = vpop.eup %1697 }
0x145a   :  { %v1700_v53 = vpop.eup %1699  ;;  %v1196_v59 = vmul.f32 %v1698_v18, %v1192_v57 }
0x145b   :  { %v1197_v60 = vmul.f32 %v1700_v53, %v1193_v58 }
0x14bd   :  { %v1201_v14 = vpop.permute.xlu1 %1200 }
0x14be   :  { %v1203_v54 = vpop.permute.xlu0 %1202  ;;  %v1206_v55 = vmul.f32 %v1698_v18, %v1201_v14 }
0x14bf   :  { %v1207_v56 = vmul.f32 %v1700_v53, %v1203_v54 }
0x14c0   :  { %1210 = vrot.lane.b32.xlu1 %v1206_v55, %s1733_s3 }
0x14c1   :  { %1212 = vrot.lane.b32.xlu0 %v1207_v56, %s1733_s3 }
0x1532   :  { %v1211_v61 = vpop.permute.xlu1 %1210 }
0x1533   :  { %v1213_v62 = vpop.permute.xlu0 %1212  ;;  %v1216_v63 = vadd.f32 %v1211_v61, %v1196_v59 }
0x1534   :  { %v1217_v0 = vadd.f32 %v1213_v62, %v1197_v60 }
0x1535   :  { %1701 = vtanh.f32 %v1216_v63 }
0x1536   :  { %1703 = vtanh.f32 %v1217_v0 }
0x153f   :  { %v1702_v11 = vpop.eup %1701 }
0x1540   :  { %v1704_v10 = vpop.eup %1703  ;;  %1222 = vrot.lane.b32.xlu1 %v1702_v11, %s1732_s10 }
0x1541   :  { %1224 = vrot.lane.b32.xlu0 %v1704_v10, %s1732_s10 }
0x15b2   :  { %v1223_v12 = vpop.permute.xlu1 %1222 }
0x15b3   :  { %v1225_v13 = vpop.permute.xlu0 %1224  ;;  %v1228_v15 = vmul.f32 %v1698_v18, %v1223_v12 }
0x15b4   :  { %v1229_v16 = vmul.f32 %v1700_v53, %v1225_v13 }
0x15b5   :  { %v1243_v17 = vrot.slane %v1228_v15, 7 }
0x15b6   :  { %v1244_v19 = vrot.slane %v1229_v16, 6 }
0x15b8   :  { %v1245_v20 = vsel %vm255_vm3, %v1244_v19, %v1243_v17 }
0x15b9   :  { %1246 = vrot.lane.b32.xlu1 %v1245_v20, %s1733_s3 }
0x162b   :  { %v1247_v21 = vpop.permute.xlu1 %1246 }
0x162c   :  { %1515 = vmatmul.mubr.msk.f32.vlgmr.msra.gmra.mrb[8].mxu1 %vm124_vm4, %v1247_v21 }
0x16ff   :  { %v1316_v22 = vpop.f32.mrb[8].mxu1 }
0x1700   :  { %v1317_v23 = vadd.f32 %v1363_v3, %v1316_v22  ;;  %v1516_v24 = vpop.f32.mrb[9].mxu1 }
0x1702   :  { %1321 = vst.msk [vmem:[#allocation2] sm:$0x3] %vm1320_vm5, %v1317_v23 }
0x1703   :  { %1716 = shalt.err (!%p1713_p4)
}
0x1704   :  { %s1717_s25 = scalar_lea.hbm %s1976_s6, 32 }
0x1705   :  { %p1718_p5 = scmp.ne.s32.totalorder %s1976_s6, %s1717_s25  ;;  %p1721_p6 = scmp.lt.u32.totalorder %s1717_s25, %s1976_s6 }
0x1707   :  { %p1723_p7 = pnand %p1721_p6, %p1718_p5 }
0x1709   :  { %1726 = shalt.err (!%p1723_p7)
}
0x170a   :  { %1331 = dma.vmem_to_hbm [thread:$0]  %s1329_s21, 32, %s1976_s6, [#allocation3]  }
0x170b   :  { %1727 = dma.done.wait [#allocation3], 32  }
0x170c   :  { %1728 = vsyncadd [#allocation3], 4294967264 }
0x170d   :  { %1335 = vsyncpa [#allocation3], 1 }

</bundles_post_ra>
